<compile_context>
chip_gen: v6e
topology: v6e:2x2x1
jax: 0.10.0
libtpu: 0.0.40
codegen_flags: <defaults>
</compile_context>

<pallas_src>
import functools
import numpy as np
import jax
import jax.numpy as jnp
from jax.experimental import pallas as pl
from jax.experimental.pallas import tpu as pltpu


def _round_up(x, m):
    return ((x + m - 1) // m) * m


# --------------------------------------------------------------------------
# Pass 1: conv (im2col GEMM, bf16 MXU) + per-tile BN statistics.
#   patches_ref : (ps2, K, TILE)   bf16   pixels on lanes
#   w_ref       : (Cout, K)        bf16
#   b_ref       : (Cout, 1)        f32
#   conv_ref    : (ps2, Cout, TILE) f32   conv output (pre-BN), lane-dense
#   sum_ref     : (1, Cout, 1)     f32   per-tile sum over valid pixels
#   sq_ref      : (1, Cout, 1)     f32   per-tile sum of squares
# --------------------------------------------------------------------------
def _conv_stats_kernel(patches_ref, w_ref, b_ref,
                       conv_ref, sum_ref, sq_ref, *, ps2, n_valid, tile):
    t = pl.program_id(0)
    cout = w_ref.shape[0]

    # Lane-validity mask (padded output-pixel columns must not pollute BN stats).
    lane = jax.lax.broadcasted_iota(jnp.int32, (1, tile), 1) + t * tile
    mask = (lane < n_valid).astype(jnp.float32)                     # (1, TILE)

    w = w_ref[...]                                                   # bf16
    b = b_ref[...]                                                   # f32
    s_sum = jnp.zeros((cout, 1), jnp.float32)
    s_sq = jnp.zeros((cout, 1), jnp.float32)

    for s in range(ps2):                                             # ps2 <= 4
        acc = jnp.dot(w, patches_ref[s],
                      preferred_element_type=jnp.float32) + b        # (Cout, TILE)
        conv_ref[s] = acc
        masked = acc * mask
        s_sum = s_sum + jnp.sum(masked, axis=1, keepdims=True)
        s_sq = s_sq + jnp.sum(masked * acc, axis=1, keepdims=True)

    sum_ref[0] = s_sum
    sq_ref[0] = s_sq


# --------------------------------------------------------------------------
# Pass 2: BN affine (precomputed scale/shift) + GLU(cat(x,x)) + AvgPool.
#   conv_ref  : (ps2, Cout, TILE) f32
#   scale_ref : (Cout, 1) f32     gamma / sqrt(var + eps)
#   shift_ref : (Cout, 1) f32     beta - mean * scale
#   out_ref   : (Cout, TILE) f32  pooled output, lane-dense
# --------------------------------------------------------------------------
def _bn_glu_pool_kernel(conv_ref, scale_ref, shift_ref, out_ref, *, ps2):
    scale = scale_ref[...]
    shift = shift_ref[...]
    acc = jnp.zeros(out_ref.shape, jnp.float32)
    for s in range(ps2):
        y = conv_ref[s] * scale + shift
        acc = acc + y * jax.nn.sigmoid(y)          # GLU(cat(y, y)) == SiLU(y)
    out_ref[...] = (acc * (1.0 / ps2)).astype(out_ref.dtype)


def conv_block_crnn(x_nchw, weight, bias, gamma, beta, *,
                    pool_size=2, do_pool=True, eps=1e-5):
    N, Cin, H, W = x_nchw.shape
    Cout, Cin_w, KH, KW = weight.shape
    assert Cin == Cin_w

    ps = pool_size if do_pool else 1
    ps2 = ps * ps
    assert H % ps == 0 and W % ps == 0, "H, W must be divisible by pool_size"
    Ho, Wo = H // ps, W // ps

    # PyTorch 'same' padding: left = total // 2, right = total - left.
    ph, pw = KH - 1, KW - 1
    ph_l, pw_l = ph // 2, pw // 2
    ph_r, pw_r = ph - ph_l, pw - pw_l

    x = jnp.transpose(x_nchw, (0, 2, 3, 1)).astype(jnp.float32)      # NHWC
    xpad = jnp.pad(x, ((0, 0), (ph_l, ph_r), (pw_l, pw_r), (0, 0)))

    # im2col with (pool-slot, K, pixel) layout: pixels on the lane axis.
    #   s = i*ps + j (position inside the pool window)
    #   K = (kh, kw, cin)   matches weight reshape below
    #   p = n*Ho*Wo + ho*Wo + wo
    taps = jnp.stack([xpad[:, kh:kh + H, kw:kw + W, :]
                      for kh in range(KH) for kw in range(KW)], axis=0)
    taps = taps.reshape(KH * KW, N, Ho, ps, Wo, ps, Cin)
    taps = jnp.transpose(taps, (3, 5, 0, 6, 1, 2, 4))                # (i,j,KK,Cin,N,Ho,Wo)

    K = KH * KW * Cin
    NOUT = N * Ho * Wo
    patches = taps.reshape(ps2, K, NOUT).astype(jnp.bfloat16)        # bf16 MXU input

    w2 = jnp.transpose(weight, (0, 2, 3, 1)).reshape(Cout, K).astype(jnp.bfloat16)
    b2 = bias.reshape(Cout, 1).astype(jnp.float32)

    # Lane (pixel) tiling: multiples of 128, capped at 1024 lanes per tile.
    TILE = min(1024, _round_up(NOUT, 128))
    NOUT_pad = _round_up(NOUT, TILE)
    num_tiles = NOUT_pad // TILE
    if NOUT_pad != NOUT:
        patches = jnp.pad(patches, ((0, 0), (0, 0), (0, NOUT_pad - NOUT)))

    cparams = pltpu.CompilerParams(
        dimension_semantics=("parallel",),          # megacore on v7x
        vmem_limit_bytes=32 * 1024 * 1024)          # safe on v5e/v6e/v7x

    # -------------------- pass 1: conv + BN statistics --------------------
    conv_out, part_sum, part_sq = pl.pallas_call(
        functools.partial(_conv_stats_kernel, ps2=ps2, n_valid=NOUT, tile=TILE),
        out_shape=(
            jax.ShapeDtypeStruct((ps2, Cout, NOUT_pad), jnp.float32),
            jax.ShapeDtypeStruct((num_tiles, Cout, 1), jnp.float32),
            jax.ShapeDtypeStruct((num_tiles, Cout, 1), jnp.float32),
        ),
        grid_spec=pltpu.PrefetchScalarGridSpec(
            num_scalar_prefetch=0,
            grid=(num_tiles,),
            in_specs=[
                pl.BlockSpec((ps2, K, TILE), lambda t: (0, 0, t)),
                pl.BlockSpec((Cout, K), lambda t: (0, 0)),
                pl.BlockSpec((Cout, 1), lambda t: (0, 0)),
            ],
            out_specs=(
                pl.BlockSpec((ps2, Cout, TILE), lambda t: (0, 0, t)),
                pl.BlockSpec((1, Cout, 1), lambda t: (t, 0, 0)),
                pl.BlockSpec((1, Cout, 1), lambda t: (t, 0, 0)),
            ),
        ),
        compiler_params=cparams,
        cost_estimate=pl.CostEstimate(
            flops=2 * ps2 * Cout * K * NOUT_pad,
            transcendentals=0,
            bytes_accessed=(patches.size * 2 + w2.size * 2
                            + ps2 * Cout * NOUT_pad * 4)),
    )(patches, w2, b2)

    # BN batch stats (training mode, biased variance), folded into scale/shift.
    cnt = float(N * H * W)
    mean = part_sum.sum(axis=0) / cnt                                 # (Cout, 1)
    var = jnp.maximum(part_sq.sum(axis=0) / cnt - mean * mean, 0.0)   # (Cout, 1)
    scale = gamma.reshape(Cout, 1).astype(jnp.float32) * jax.lax.rsqrt(var + eps)
    shift = beta.reshape(Cout, 1).astype(jnp.float32) - mean * scale

    # -------------------- pass 2: BN + GLU + AvgPool -----------------------
    out2d = pl.pallas_call(
        functools.partial(_bn_glu_pool_kernel, ps2=ps2),
        out_shape=jax.ShapeDtypeStruct((Cout, NOUT_pad), jnp.float32),
        grid_spec=pltpu.PrefetchScalarGridSpec(
            num_scalar_prefetch=0,
            grid=(num_tiles,),
            in_specs=[
                pl.BlockSpec((ps2, Cout, TILE), lambda t: (0, 0, t)),
                pl.BlockSpec((Cout, 1), lambda t: (0, 0)),
                pl.BlockSpec((Cout, 1), lambda t: (0, 0)),
            ],
            out_specs=pl.BlockSpec((Cout, TILE), lambda t: (0, t)),
        ),
        compiler_params=cparams,
        cost_estimate=pl.CostEstimate(
            flops=6 * ps2 * Cout * NOUT_pad,
            transcendentals=ps2 * Cout * NOUT_pad,
            bytes_accessed=(ps2 + 1) * Cout * NOUT_pad * 4),
    )(conv_out, scale, shift)

    # Channel-major result -> NCHW (cheap: output is already lane-dense).
    out = out2d[:, :NOUT].reshape(Cout, N, Ho, Wo)
    return jnp.transpose(out, (1, 0, 2, 3))


def _reference(x_nchw, weight, bias, gamma, beta, *, pool_size, do_pool, eps):
    y = jax.lax.conv_general_dilated(
        x_nchw, weight, window_strides=(1, 1), padding='SAME',
        dimension_numbers=('NCHW', 'OIHW', 'NCHW'))
    y = y + bias[None, :, None, None]
    mean = y.mean(axis=(0, 2, 3), keepdims=True)
    var = ((y - mean) ** 2).mean(axis=(0, 2, 3), keepdims=True)
    y = (y - mean) / jnp.sqrt(var + eps)
    y = y * gamma[None, :, None, None] + beta[None, :, None, None]
    y = y * jax.nn.sigmoid(y)                      # GLU(cat(y, y)) == SiLU(y)
    if do_pool:
        N, C, H, W = y.shape
        y = y.reshape(N, C, H // pool_size, pool_size,
                      W // pool_size, pool_size).mean(axis=(3, 5))
    return y


if __name__ == "__main__":
    N, Cin, Cout, H, W = 2, 4, 8, 16, 16
    KH = KW = 3
    pool_size = 2

    key = jax.random.PRNGKey(0)
    k1, k2, k3, k4, k5 = jax.random.split(key, 5)
    weight = 0.1 * jax.random.normal(k1, (Cout, Cin, KH, KW), jnp.float32)
    bias = 0.1 * jax.random.normal(k2, (Cout,), jnp.float32)
    gamma = 1.0 + 0.1 * jax.random.normal(k3, (Cout,), jnp.float32)
    beta = 0.1 * jax.random.normal(k4, (Cout,), jnp.float32)
    x = jax.random.normal(k5, (N, Cin, H, W), jnp.float32)

    # do_pool=True path
    out = conv_block_crnn(x, weight, bias, gamma, beta,
                          pool_size=pool_size, do_pool=True)
    out = jax.block_until_ready(out)
    ref = _reference(x, weight, bias, gamma, beta,
                     pool_size=pool_size, do_pool=True, eps=1e-5)
    ref = jax.block_until_ready(ref)
    assert out.shape == (N, Cout, H // pool_size, W // pool_size), out.shape
    np.testing.assert_allclose(np.asarray(out), np.asarray(ref),
                               rtol=2e-2, atol=2e-2)

    # do_pool=False path (no pooling work at all, not an identity matmul)
    out_np = conv_block_crnn(x, weight, bias, gamma, beta,
                             pool_size=pool_size, do_pool=False)
    out_np = jax.block_until_ready(out_np)
    ref_np = _reference(x, weight, bias, gamma, beta,
                        pool_size=pool_size, do_pool=False, eps=1e-5)
    ref_np = jax.block_until_ready(ref_np)
    assert out_np.shape == (N, Cout, H, W), out_np.shape
    np.testing.assert_allclose(np.asarray(out_np), np.asarray(ref_np),
                               rtol=2e-2, atol=2e-2)

    print("KERNEL_OK")
</pallas_src>

<mosaic_0001>
module attributes {stable_mosaic.version = 11 : i64} {
  func.func @_conv_stats_kernel(%arg0: i32, %arg1: memref<4x36x128xbf16, #tpu.memory_space<vmem>>, %arg2: memref<8x36xbf16, #tpu.memory_space<vmem>>, %arg3: memref<8x1xf32, #tpu.memory_space<vmem>>, %arg4: memref<4x8x128xf32, #tpu.memory_space<vmem>>, %arg5: memref<1x8x1xf32, #tpu.memory_space<vmem>>, %arg6: memref<1x8x1xf32, #tpu.memory_space<vmem>>) attributes {dimension_semantics = [#tpu.dimension_semantics<parallel>], iteration_bounds = array<i64: 1>, scalar_prefetch = 0 : i64, scratch_operands = 0 : i64, tpu.core_type = #tpu.core_type<tc>, window_params = [{transform_indices = @transform_0, window_bounds = array<i64: 4, 36, 128>}, {pipeline_mode = #tpu.pipeline_mode<synchronous>, transform_indices = @transform_1, window_bounds = array<i64: 8, 36>}, {pipeline_mode = #tpu.pipeline_mode<synchronous>, transform_indices = @transform_2, window_bounds = array<i64: 8, 1>}, {transform_indices = @transform_3, window_bounds = array<i64: 4, 8, 128>}, {transform_indices = @transform_4, window_bounds = array<i64: 1, 8, 1>}, {transform_indices = @transform_5, window_bounds = array<i64: 1, 8, 1>}]} {
    %0 = tpu.iota {dimensions = array<i32: 1>} : vector<1x128xi32>
    %c128_i32 = arith.constant 128 : i32
    %1 = arith.muli %arg0, %c128_i32 : i32
    %2 = vector.broadcast %1 : i32 to vector<1x128xi32>
    %3 = arith.addi %0, %2 : vector<1x128xi32>
    %c128_i32_0 = arith.constant 128 : i32
    %4 = vector.broadcast %c128_i32_0 : i32 to vector<1x128xi32>
    %5 = arith.cmpi slt, %3, %4 : vector<1x128xi32>
    %6 = arith.extui %5 : vector<1x128xi1> to vector<1x128xi32>
    %7 = arith.sitofp %6 : vector<1x128xi32> to vector<1x128xf32>
    %c0 = arith.constant 0 : index
    %c0_1 = arith.constant 0 : index
    %8 = vector.load %arg2[%c0, %c0_1] : memref<8x36xbf16, #tpu.memory_space<vmem>>, vector<8x36xbf16>
    %c0_2 = arith.constant 0 : index
    %c0_3 = arith.constant 0 : index
    %9 = vector.load %arg3[%c0_2, %c0_3] : memref<8x1xf32, #tpu.memory_space<vmem>>, vector<8x1xf32>
    %cst = arith.constant 0.000000e+00 : f32
    %10 = vector.broadcast %cst : f32 to vector<8x1xf32>
    %cst_4 = arith.constant 0.000000e+00 : f32
    %11 = vector.broadcast %cst_4 : f32 to vector<8x1xf32>
    %c0_5 = arith.constant 0 : index
    %c0_6 = arith.constant 0 : index
    %c0_7 = arith.constant 0 : index
    %12 = vector.load %arg1[%c0_5, %c0_6, %c0_7] : memref<4x36x128xbf16, #tpu.memory_space<vmem>>, vector<1x36x128xbf16>
    %13 = vector.shape_cast %12 : vector<1x36x128xbf16> to vector<36x128xbf16>
    %cst_8 = arith.constant dense<0.000000e+00> : vector<8x128xf32>
    %14 = tpu.matmul %8, %13, %cst_8 {dimension_numbers = #tpu.dot_dimension_numbers<[1], [0], [0], [1], [0, 0, 1, 1], [], []>} : vector<8x36xbf16>, vector<36x128xbf16>, vector<8x128xf32> -> vector<8x128xf32>
    %15 = vector.broadcast %9 : vector<8x1xf32> to vector<8x128xf32>
    %16 = arith.addf %14, %15 : vector<8x128xf32>
    %c0_9 = arith.constant 0 : index
    %c0_10 = arith.constant 0 : index
    %c0_11 = arith.constant 0 : index
    %17 = vector.load %arg4[%c0_9, %c0_10, %c0_11] : memref<4x8x128xf32, #tpu.memory_space<vmem>>, vector<1x8x128xf32>
    %18 = vector.shape_cast %17 : vector<1x8x128xf32> to vector<8x128xf32>
    %19 = vector.shape_cast %16 : vector<8x128xf32> to vector<1x8x128xf32>
    tpu.vector_store %arg4[%c0_9, %c0_10, %c0_11], %19 {strides = array<i32>} : memref<4x8x128xf32, #tpu.memory_space<vmem>>, vector<1x8x128xf32>,
    %20 = vector.broadcast %7 : vector<1x128xf32> to vector<8x128xf32>
    %21 = arith.mulf %16, %20 : vector<8x128xf32>
    %cst_12 = arith.constant dense<0.000000e+00> : vector<8xf32>
    %22 = vector.multi_reduction <add>, %21, %cst_12 [1] : vector<8x128xf32> to vector<8xf32>
    %23 = vector.shape_cast %22 : vector<8xf32> to vector<8x1xf32>
    %24 = arith.addf %10, %23 : vector<8x1xf32>
    %25 = arith.mulf %21, %16 : vector<8x128xf32>
    %cst_13 = arith.constant dense<0.000000e+00> : vector<8xf32>
    %26 = vector.multi_reduction <add>, %25, %cst_13 [1] : vector<8x128xf32> to vector<8xf32>
    %27 = vector.shape_cast %26 : vector<8xf32> to vector<8x1xf32>
    %28 = arith.addf %11, %27 : vector<8x1xf32>
    %c1 = arith.constant 1 : index
    %c0_14 = arith.constant 0 : index
    %c0_15 = arith.constant 0 : index
    %29 = vector.load %arg1[%c1, %c0_14, %c0_15] : memref<4x36x128xbf16, #tpu.memory_space<vmem>>, vector<1x36x128xbf16>
    %30 = vector.shape_cast %29 : vector<1x36x128xbf16> to vector<36x128xbf16>
    %cst_16 = arith.constant dense<0.000000e+00> : vector<8x128xf32>
    %31 = tpu.matmul %8, %30, %cst_16 {dimension_numbers = #tpu.dot_dimension_numbers<[1], [0], [0], [1], [0, 0, 1, 1], [], []>} : vector<8x36xbf16>, vector<36x128xbf16>, vector<8x128xf32> -> vector<8x128xf32>
    %32 = vector.broadcast %9 : vector<8x1xf32> to vector<8x128xf32>
    %33 = arith.addf %31, %32 : vector<8x128xf32>
    %c1_17 = arith.constant 1 : index
    %c0_18 = arith.constant 0 : index
    %c0_19 = arith.constant 0 : index
    %34 = vector.load %arg4[%c1_17, %c0_18, %c0_19] : memref<4x8x128xf32, #tpu.memory_space<vmem>>, vector<1x8x128xf32>
    %35 = vector.shape_cast %34 : vector<1x8x128xf32> to vector<8x128xf32>
    %36 = vector.shape_cast %33 : vector<8x128xf32> to vector<1x8x128xf32>
    tpu.vector_store %arg4[%c1_17, %c0_18, %c0_19], %36 {strides = array<i32>} : memref<4x8x128xf32, #tpu.memory_space<vmem>>, vector<1x8x128xf32>,
    %37 = vector.broadcast %7 : vector<1x128xf32> to vector<8x128xf32>
    %38 = arith.mulf %33, %37 : vector<8x128xf32>
    %cst_20 = arith.constant dense<0.000000e+00> : vector<8xf32>
    %39 = vector.multi_reduction <add>, %38, %cst_20 [1] : vector<8x128xf32> to vector<8xf32>
    %40 = vector.shape_cast %39 : vector<8xf32> to vector<8x1xf32>
    %41 = arith.addf %24, %40 : vector<8x1xf32>
    %42 = arith.mulf %38, %33 : vector<8x128xf32>
    %cst_21 = arith.constant dense<0.000000e+00> : vector<8xf32>
    %43 = vector.multi_reduction <add>, %42, %cst_21 [1] : vector<8x128xf32> to vector<8xf32>
    %44 = vector.shape_cast %43 : vector<8xf32> to vector<8x1xf32>
    %45 = arith.addf %28, %44 : vector<8x1xf32>
    %c2 = arith.constant 2 : index
    %c0_22 = arith.constant 0 : index
    %c0_23 = arith.constant 0 : index
    %46 = vector.load %arg1[%c2, %c0_22, %c0_23] : memref<4x36x128xbf16, #tpu.memory_space<vmem>>, vector<1x36x128xbf16>
    %47 = vector.shape_cast %46 : vector<1x36x128xbf16> to vector<36x128xbf16>
    %cst_24 = arith.constant dense<0.000000e+00> : vector<8x128xf32>
    %48 = tpu.matmul %8, %47, %cst_24 {dimension_numbers = #tpu.dot_dimension_numbers<[1], [0], [0], [1], [0, 0, 1, 1], [], []>} : vector<8x36xbf16>, vector<36x128xbf16>, vector<8x128xf32> -> vector<8x128xf32>
    %49 = vector.broadcast %9 : vector<8x1xf32> to vector<8x128xf32>
    %50 = arith.addf %48, %49 : vector<8x128xf32>
    %c2_25 = arith.constant 2 : index
    %c0_26 = arith.constant 0 : index
    %c0_27 = arith.constant 0 : index
    %51 = vector.load %arg4[%c2_25, %c0_26, %c0_27] : memref<4x8x128xf32, #tpu.memory_space<vmem>>, vector<1x8x128xf32>
    %52 = vector.shape_cast %51 : vector<1x8x128xf32> to vector<8x128xf32>
    %53 = vector.shape_cast %50 : vector<8x128xf32> to vector<1x8x128xf32>
    tpu.vector_store %arg4[%c2_25, %c0_26, %c0_27], %53 {strides = array<i32>} : memref<4x8x128xf32, #tpu.memory_space<vmem>>, vector<1x8x128xf32>,
    %54 = vector.broadcast %7 : vector<1x128xf32> to vector<8x128xf32>
    %55 = arith.mulf %50, %54 : vector<8x128xf32>
    %cst_28 = arith.constant dense<0.000000e+00> : vector<8xf32>
    %56 = vector.multi_reduction <add>, %55, %cst_28 [1] : vector<8x128xf32> to vector<8xf32>
    %57 = vector.shape_cast %56 : vector<8xf32> to vector<8x1xf32>
    %58 = arith.addf %41, %57 : vector<8x1xf32>
    %59 = arith.mulf %55, %50 : vector<8x128xf32>
    %cst_29 = arith.constant dense<0.000000e+00> : vector<8xf32>
    %60 = vector.multi_reduction <add>, %59, %cst_29 [1] : vector<8x128xf32> to vector<8xf32>
    %61 = vector.shape_cast %60 : vector<8xf32> to vector<8x1xf32>
    %62 = arith.addf %45, %61 : vector<8x1xf32>
    %c3 = arith.constant 3 : index
    %c0_30 = arith.constant 0 : index
    %c0_31 = arith.constant 0 : index
    %63 = vector.load %arg1[%c3, %c0_30, %c0_31] : memref<4x36x128xbf16, #tpu.memory_space<vmem>>, vector<1x36x128xbf16>
    %64 = vector.shape_cast %63 : vector<1x36x128xbf16> to vector<36x128xbf16>
    %cst_32 = arith.constant dense<0.000000e+00> : vector<8x128xf32>
    %65 = tpu.matmul %8, %64, %cst_32 {dimension_numbers = #tpu.dot_dimension_numbers<[1], [0], [0], [1], [0, 0, 1, 1], [], []>} : vector<8x36xbf16>, vector<36x128xbf16>, vector<8x128xf32> -> vector<8x128xf32>
    %66 = vector.broadcast %9 : vector<8x1xf32> to vector<8x128xf32>
    %67 = arith.addf %65, %66 : vector<8x128xf32>
    %c3_33 = arith.constant 3 : index
    %c0_34 = arith.constant 0 : index
    %c0_35 = arith.constant 0 : index
    %68 = vector.load %arg4[%c3_33, %c0_34, %c0_35] : memref<4x8x128xf32, #tpu.memory_space<vmem>>, vector<1x8x128xf32>
    %69 = vector.shape_cast %68 : vector<1x8x128xf32> to vector<8x128xf32>
    %70 = vector.shape_cast %67 : vector<8x128xf32> to vector<1x8x128xf32>
    tpu.vector_store %arg4[%c3_33, %c0_34, %c0_35], %70 {strides = array<i32>} : memref<4x8x128xf32, #tpu.memory_space<vmem>>, vector<1x8x128xf32>,
    %71 = vector.broadcast %7 : vector<1x128xf32> to vector<8x128xf32>
    %72 = arith.mulf %67, %71 : vector<8x128xf32>
    %cst_36 = arith.constant dense<0.000000e+00> : vector<8xf32>
    %73 = vector.multi_reduction <add>, %72, %cst_36 [1] : vector<8x128xf32> to vector<8xf32>
    %74 = vector.shape_cast %73 : vector<8xf32> to vector<8x1xf32>
    %75 = arith.addf %58, %74 : vector<8x1xf32>
    %76 = arith.mulf %72, %67 : vector<8x128xf32>
    %cst_37 = arith.constant dense<0.000000e+00> : vector<8xf32>
    %77 = vector.multi_reduction <add>, %76, %cst_37 [1] : vector<8x128xf32> to vector<8xf32>
    %78 = vector.shape_cast %77 : vector<8xf32> to vector<8x1xf32>
    %79 = arith.addf %62, %78 : vector<8x1xf32>
    %c0_38 = arith.constant 0 : index
    %c0_39 = arith.constant 0 : index
    %c0_40 = arith.constant 0 : index
    %80 = vector.load %arg5[%c0_38, %c0_39, %c0_40] : memref<1x8x1xf32, #tpu.memory_space<vmem>>, vector<1x8x1xf32>
    %81 = vector.shape_cast %80 : vector<1x8x1xf32> to vector<8x1xf32>
    %82 = vector.shape_cast %75 : vector<8x1xf32> to vector<1x8x1xf32>
    tpu.vector_store %arg5[%c0_38, %c0_39, %c0_40], %82 {strides = array<i32>} : memref<1x8x1xf32, #tpu.memory_space<vmem>>, vector<1x8x1xf32>,
    %c0_41 = arith.constant 0 : index
    %c0_42 = arith.constant 0 : index
    %c0_43 = arith.constant 0 : index
    %83 = vector.load %arg6[%c0_41, %c0_42, %c0_43] : memref<1x8x1xf32, #tpu.memory_space<vmem>>, vector<1x8x1xf32>
    %84 = vector.shape_cast %83 : vector<1x8x1xf32> to vector<8x1xf32>
    %85 = vector.shape_cast %79 : vector<8x1xf32> to vector<1x8x1xf32>
    tpu.vector_store %arg6[%c0_41, %c0_42, %c0_43], %85 {strides = array<i32>} : memref<1x8x1xf32, #tpu.memory_space<vmem>>, vector<1x8x1xf32>,
    return
  }
  func.func @transform_0(%arg0: i32) -> (i32, i32, i32) {
    %c0_i32 = arith.constant 0 : i32
    %c0_i32_0 = arith.constant 0 : i32
    %c0_i32_1 = arith.constant 0 : i32
    return %c0_i32, %c0_i32_0, %arg0 : i32, i32, i32
  }
  func.func @transform_1(%arg0: i32) -> (i32, i32) {
    %c0_i32 = arith.constant 0 : i32
    %c0_i32_0 = arith.constant 0 : i32
    %c0_i32_1 = arith.constant 0 : i32
    return %c0_i32, %c0_i32_0 : i32, i32
  }
  func.func @transform_2(%arg0: i32) -> (i32, i32) {
    %c0_i32 = arith.constant 0 : i32
    %c0_i32_0 = arith.constant 0 : i32
    %c0_i32_1 = arith.constant 0 : i32
    return %c0_i32, %c0_i32_0 : i32, i32
  }
  func.func @transform_3(%arg0: i32) -> (i32, i32, i32) {
    %c0_i32 = arith.constant 0 : i32
    %c0_i32_0 = arith.constant 0 : i32
    %c0_i32_1 = arith.constant 0 : i32
    return %c0_i32, %c0_i32_0, %arg0 : i32, i32, i32
  }
  func.func @transform_4(%arg0: i32) -> (i32, i32, i32) {
    %c0_i32 = arith.constant 0 : i32
    %c0_i32_0 = arith.constant 0 : i32
    %c0_i32_1 = arith.constant 0 : i32
    return %arg0, %c0_i32, %c0_i32_0 : i32, i32, i32
  }
  func.func @transform_5(%arg0: i32) -> (i32, i32, i32) {
    %c0_i32 = arith.constant 0 : i32
    %c0_i32_0 = arith.constant 0 : i32
    %c0_i32_1 = arith.constant 0 : i32
    return %arg0, %c0_i32, %c0_i32_0 : i32, i32, i32
  }
}

</mosaic_0001>

<bundles_post_ra>
// kernel: tpu_custom_call.1
= control target key start
LH: loop header
LB: loop body
LE: loop exit
PB: predicated region body
PF: predicated region fallthrough
CT: control target
= control target key end

     0   :  { %v488_v1 = vmov 0.0   ;;  %vm58_vm0 = vcmask 1041408   ;;  %vm489_vm1 = vmmov 0   ;;  %v490_v11 = vmov 0   ;;  %s587_s0 = inlined_call_operand.vmem [shape: bf16[4,36,128], index: 0, kind: input, shape index: {}]   ;;  %s588_s1 = inlined_call_operand.vmem [shape: bf16[8,36], index: 1, kind: input, shape index: {}]   ;;  %s589_s2 = inlined_call_operand.vmem [shape: f32[8,1], index: 2, kind: input, shape index: {}]   ;;  %s590_s3 = inlined_call_operand.hbm [shape: f32[4,8,128], index: 3, kind: output, shape index: {0}]   ;;  %s591_s4 = inlined_call_operand.vmem [shape: f32[1,8,1], index: 4, kind: output, shape index: {1}]   ;;  %s592_s5 = inlined_call_operand.vmem [shape: f32[1,8,1], index: 5, kind: output, shape index: {2}]  }
   0x1   :  { %v454_v0 = vld [vmem:[%s587_s0 + $0x10] ss:$0 sps:$4 sm:$0x33]   ;;  %407 = vmatprep.subr.bf16.mxu0 %v488_v1  ;;  %417 = vmatprep.subr.bf16.mxu1 %v488_v1  ;;  %v455_v2 = vld [vmem:[%s587_s0 + $0x24] ss:$0 sps:$4 sm:$0x33]  }
   0x2   :  { %v60_v3 = vsel %vm58_vm0, %v454_v0, 0  ;;  %v133_v4 = vsel %vm58_vm0, %v455_v2, 0  ;;  %v456_v5 = vld [vmem:[%s587_s0 + $0x8] sm:$0xff]   ;;  %v457_v6 = vld [vmem:[%s587_s0 + $0x1c] sm:$0xff]   ;;  %413 = vmatprep.mubr.msk.bf16.mxu0 %vm489_vm1, %v488_v1  ;;  %423 = vmatprep.mubr.msk.bf16.mxu1 %vm489_vm1, %v488_v1  ;;  %v459_v10 = vld [vmem:[%s587_s0 + $0x14] sm:$0xff]   ;;  %vm54_vm2 = vcmask 293888  }
   0x3   :  { %408 = vmatpush3.bf16.msra.mxu0 %v60_v3  ;;  %418 = vmatpush3.bf16.msra.mxu1 %v133_v4  ;;  %v458_v7 = vld [vmem:[%s587_s0] sm:$0xff]   ;;  %v460_v8 = vld [vmem:[%s587_s0 + $0x38] ss:$0 sps:$4 sm:$0x33]  }
   0x4   :  { %409 = vmatprep.subr.bf16.mxu0 %v488_v1  ;;  %419 = vmatprep.subr.bf16.mxu1 %v488_v1  ;;  %v461_v9 = vld [vmem:[%s587_s0 + $0x4c] ss:$0 sps:$4 sm:$0x33]   ;;  %v27_v12 = vld [vmem:[%s588_s1] sm:$0xf]  ;;  %v207_v13 = vsel %vm58_vm0, %v460_v8, 0 }
   0x5   :  { %453 = vset.pattern.permute.xlu0 %v490_v11  ;;  %v28_v14 = vld [vmem:[%s589_s2] sm:$0xff] }
   0x7   :  { %410 = vmatpush3.bf16.msra.mxu0 %v456_v5  ;;  %420 = vmatpush3.bf16.msra.mxu1 %v457_v6 }
   0x8   :  { %411 = vmatprep.subr.bf16.mxu0 %v488_v1  ;;  %421 = vmatprep.subr.bf16.mxu1 %v488_v1 }
   0xb   :  { %412 = vmatpush3.bf16.msra.mxu0 %v458_v7  ;;  %422 = vmatpush3.bf16.msra.mxu1 %v459_v10 }
   0xc   :  { %427 = vmatprep.subr.bf16.mxu0 %v488_v1 }
   0xd   :  { %11 = vsyncpa [#allocation3], 0  ;;  %437 = vmatprep.subr.bf16.mxu1 %v488_v1  ;;  %v281_v15 = vsel %vm58_vm0, %v461_v9, 0  ;;  %36 = vperm.xlu0 %453, %v28_v14   ;;  %v462_v16 = vld [vmem:[%s587_s0 + $0x30] sm:$0xff]   ;;  %v463_v17 = vld [vmem:[%s587_s0 + $0x44] sm:$0xff]  }
   0xe   :  { %414 = vmatmul.mubr.msk.bf16.vlgmr.msra.gmra.mxu0 %vm54_vm2, %v27_v12  ;;  %424 = vmatmul.mubr.msk.bf16.vlgmr.msra.gmra.mxu1 %vm54_vm2, %v27_v12  ;;  %v464_v18 = vld [vmem:[%s587_s0 + $0x28] sm:$0xff]   ;;  %v465_v19 = vld [vmem:[%s587_s0 + $0x3c] sm:$0xff]   ;;  %s491_s0 = smov [#allocation2]  }
   0xf   :  { %428 = vmatpush3.bf16.msra.mxu0 %v207_v13  ;;  %438 = vmatpush3.bf16.msra.mxu1 %v281_v15  ;;  %s341_s19 = sshll.u32 %s491_s0, 4  ;;  %s342_s19 = int_to_ptr.vmem [resolvable:$true] %s341_s19 }
  0x10   :  { %429 = vmatprep.subr.bf16.mxu0 %v488_v1  ;;  %439 = vmatprep.subr.bf16.mxu1 %v488_v1  ;;  %s466_s20 = scalar_lea.vmem %s342_s19, 512  ;;  %p471_p1 = scmp.lt.s32.totalorder %s342_s19, %s342_s19 }
  0x11   :  { %433 = vmatprep.mubr.msk.bf16.mxu0 %vm489_vm1, %v488_v1  ;;  %443 = vmatprep.mubr.msk.bf16.mxu1 %vm489_vm1, %v488_v1  ;;  %p467_p0 = scmp.ne.s32.totalorder %s342_s19, %s466_s20  ;;  %p472_p2 = scmp.lt.s32.totalorder %s466_s20, %s466_s20 }
  0x13   :  { %430 = vmatpush3.bf16.msra.mxu0 %v462_v16  ;;  %440 = vmatpush3.bf16.msra.mxu1 %v463_v17  ;;  %p473_p3 = por %p472_p2, %p471_p1 }
  0x14   :  { %431 = vmatprep.subr.bf16.mxu0 %v488_v1  ;;  %441 = vmatprep.subr.bf16.mxu1 %v488_v1 }
  0x15   :  { %p474_p4 = pnand %p473_p3, %p467_p0 }
  0x17   :  { %432 = vmatpush3.bf16.msra.mxu0 %v464_v18  ;;  %442 = vmatpush3.bf16.msra.mxu1 %v465_v19 }
  0x1a   :  { %434 = vmatmul.mubr.msk.bf16.vlgmr.msra.gmra.mxu0 %vm54_vm2, %v27_v12  ;;  %444 = vmatmul.mubr.msk.bf16.vlgmr.msra.gmra.mxu1 %vm54_vm2, %v27_v12 }
  0x88   :  { %v37_v20 = vpop.permute.xlu0 %36 }
  0xce   :  { %v96_v21 = vpop.f32.mrf.mxu0  ;;  %v169_v23 = vpop.f32.mrf.mxu1 }
  0xcf   :  { %v97_v22 = vadd.f32 %v96_v21, %v37_v20  ;;  %v170_v24 = vadd.f32 %v169_v23, %v37_v20 }
  0xd0   :  { %v415_v25 = vpop.f32.mrf.mxu0  ;;  %v425_v26 = vpop.f32.mrf.mxu1 }
  0xd1   :  { %102 = vst [vmem:[#allocation2] sm:$0xff] %v97_v22  ;;  %104 = vadd.xlane.f32.xlu0 %v97_v22  ;;  %176 = vst [vmem:[#allocation2 + $0x8] sm:$0xff] %v170_v24  ;;  %178 = vadd.xlane.f32.xlu1 %v170_v24  ;;  %v107_v30 = vmul.f32 %v97_v22, %v97_v22  ;;  %v181_v32 = vmul.f32 %v170_v24, %v170_v24 }
  0xd2   :  { %v99_v27 = vpop.f32.mrf.mxu0  ;;  %v172_v28 = vpop.f32.mrf.mxu1 }
  0xd4   :  { %v416_v29 = vpop.f32.mrf.mxu0  ;;  %v426_v31 = vpop.f32.mrf.mxu1 }
  0xd5   :  { %108 = vadd.xlane.f32.xlu1 %v107_v30 }
  0xd9   :  { %182 = vadd.xlane.f32.xlu1 %v181_v32 }
  0xda   :  { %v243_v33 = vpop.f32.mrf.mxu0  ;;  %v317_v35 = vpop.f32.mrf.mxu1 }
  0xdb   :  { %v244_v34 = vadd.f32 %v243_v33, %v37_v20  ;;  %v318_v36 = vadd.f32 %v317_v35, %v37_v20 }
  0xdc   :  { %v435_v37 = vpop.f32.mrf.mxu0  ;;  %v445_v38 = vpop.f32.mrf.mxu1 }
  0xdd   :  { %250 = vst [vmem:[#allocation2 + $0x10] sm:$0xff] %v244_v34  ;;  %324 = vst [vmem:[#allocation2 + $0x18] sm:$0xff] %v318_v36  ;;  %252 = vadd.xlane.f32.xlu1 %v244_v34  ;;  %v255_v43 = vmul.f32 %v244_v34, %v244_v34  ;;  %v329_v44 = vmul.f32 %v318_v36, %v318_v36 }
  0xde   :  { %v246_v39 = vpop.f32.mrf.mxu0  ;;  %v320_v40 = vpop.f32.mrf.mxu1 }
  0xe0   :  { %v436_v41 = vpop.f32.mrf.mxu0  ;;  %v446_v42 = vpop.f32.mrf.mxu1 }
  0xe1   :  { %326 = vadd.xlane.f32.xlu1 %v318_v36 }
  0xe5   :  { %256 = vadd.xlane.f32.xlu1 %v255_v43 }
  0xe9   :  { %330 = vadd.xlane.f32.xlu1 %v329_v44 }
  0xea   :  { %477 = shalt.err (!%p474_p4)
}
  0xeb   :  { %s492_s21 = smov 128   ;;  %s493_s22 = smov 8   ;;  %vm333_vm3 = vcmask 7168  }
  0xec   :  { %347 = dma.vmem_to_hbm [thread:$0]  %s342_s19, 512, %s590_s3, [#allocation3], %s492_s21, %s492_s21, %s493_s22  }
 0x15a   :  { %v179_v45 = vpop.xlane.xlu1 %178  ;;  %v105_v48 = vpop.xlane.xlu0 %104 }
 0x15b   :  { %v180_v50 = vadd.f32 %v179_v45, %v105_v48 }
 0x15e   :  { %v109_v46 = vpop.xlane.xlu1 %108 }
 0x162   :  { %v183_v47 = vpop.xlane.xlu1 %182 }
 0x163   :  { %v184_v55 = vadd.f32 %v183_v47, %v109_v46 }
 0x166   :  { %v253_v49 = vpop.xlane.xlu1 %252 }
 0x167   :  { %v254_v51 = vadd.f32 %v253_v49, %v180_v50 }
 0x16a   :  { %v327_v52 = vpop.xlane.xlu1 %326 }
 0x16b   :  { %v328_v53 = vadd.f32 %v327_v52, %v254_v51 }
 0x16d   :  { %334 = vst.msk [vmem:[%s591_s4] sm:$0xff] %vm333_vm3, %v328_v53 }
 0x16e   :  { %v257_v54 = vpop.xlane.xlu1 %256 }
 0x16f   :  { %v258_v56 = vadd.f32 %v257_v54, %v184_v55 }
 0x172   :  { %v331_v57 = vpop.xlane.xlu1 %330 }
 0x173   :  { %v332_v58 = vadd.f32 %v331_v57, %v258_v56 }
 0x175   :  { %335 = vst.msk [vmem:[%s592_s5] sm:$0xff] %vm333_vm3, %v332_v58 }
 0x176   :  { %486 = dma.done.wait [#allocation3], 512  }
 0x177   :  { %487 = vsyncadd [#allocation3], 4294966784 }
 0x178   :  { %359 = vsyncpa [#allocation3], 1 }

</bundles_post_ra>
